<compile_context>
chip_gen: v6e
topology: v6e:2x2x1
jax: 0.10.0
libtpu: 0.0.40
codegen_flags: <defaults>
</compile_context>

<pallas_src>
import functools

import numpy as np
import jax
import jax.numpy as jnp
from jax import lax
from jax.experimental import pallas as pl
from jax.experimental.pallas import tpu as pltpu


# ----------------------------- plain-JAX glue (init / reference) -----------------------------

def extend_grid(grid, k):
    # grid: (D, G+1) -> (D, G+1+2k), uniform extension by k knots on each side.
    h = (grid[:, -1:] - grid[:, :1]) / (grid.shape[1] - 1)
    for _ in range(k):
        grid = jnp.concatenate([grid[:, :1] - h, grid, grid[:, -1:] + h], axis=1)
    return grid


def b_batch_ref(x, grid_ext, k):
    # x: (D, N), grid_ext: (D, G+1+2k) -> bases (D, G+k, N). Same recursion as pykan B_batch.
    xe = x[:, None, :]
    ge = grid_ext[:, :, None]
    b = ((xe >= ge[:, :-1]) & (xe < ge[:, 1:])).astype(x.dtype)
    for p in range(1, k + 1):
        b = ((xe - ge[:, :-(p + 1)]) / (ge[:, p:-1] - ge[:, :-(p + 1)]) * b[:, :-1]
             + (ge[:, p + 1:] - xe) / (ge[:, p + 1:] - ge[:, 1:-p]) * b[:, 1:])
    return b


def curve2coef(x_eval, y_eval, grid, k):
    # Least-squares fit of spline coefficients (init-time glue, not the hot path).
    grid_ext = extend_grid(grid, k)
    mat = jnp.transpose(b_batch_ref(x_eval, grid_ext, k), (0, 2, 1))  # (D, N, nb)
    return jnp.einsum('dbn,dn->db', jnp.linalg.pinv(mat), y_eval)      # (D, nb)


# ----------------------------------- Pallas kernels (hot path) -----------------------------------

def _bspline_kernel_uniform(x_ref, par_ref, o_ref, *, k, gext):
    # x_ref:   (CB, TD, 128)   CB lane-chunks of the batch, TD input dims on sublanes
    # par_ref: (TD, 2 + nb)    per-dim [g0, 1/h, coef/k!] for a UNIFORM extended grid
    # o_ref:   (CB, TD, 128)
    nb = gext - 1 - k
    par = par_ref[...]
    g0 = par[:, 0:1]
    inv_h = par[:, 1:2]
    cjs = [par[:, 2 + j:3 + j] for j in range(nb)]      # hoisted coef/k! columns
    n_chunks = x_ref.shape[0]

    def chunk(i, carry):
        x = x_ref[i]                                    # native (TD, 128) tile load
        u = (x - g0) * inv_h                            # normalized knot coordinate
        du = [u - float(j) for j in range(gext)]        # u - j (compile-time scalar j)
        ge = [u >= float(j) for j in range(gext)]       # shared comparisons
        # degree-0 indicator of [j, j+1)  (strict upper bound, as in the reference)
        mask = [jnp.logical_and(ge[j], jnp.logical_not(ge[j + 1]))
                for j in range(gext - 1)]

        if k == 1:
            # final level is p=1: coefficients (=coef/1!) folded straight in
            acc = None
            for j in range(nb):
                t = cjs[j] * (jnp.where(mask[j], du[j], 0.0)
                              - jnp.where(mask[j + 1], du[j + 2], 0.0))
                acc = t if acc is None else acc + t
        else:
            # p = 1: degree-0 masks fused via select (no bool->f32 casts, no mask muls)
            b = [jnp.where(mask[j], du[j], 0.0) - jnp.where(mask[j + 1], du[j + 2], 0.0)
                 for j in range(gext - 2)]
            # p = 2 .. k-1: the 1/p factors are folded into coef/k! in the wrapper
            for p in range(2, k):
                b = [du[j] * b[j] - du[j + p + 1] * b[j + 1]
                     for j in range(gext - 1 - p)]
            # p = k with coefficients folded in: y = sum_j (c_j/k!) * b'_k[j]
            acc = None
            for j in range(nb):
                t = cjs[j] * (du[j] * b[j] - du[j + k + 1] * b[j + 1])
                acc = t if acc is None else acc + t

        o_ref[i, :, :] = acc.astype(o_ref.dtype)
        return carry

    lax.fori_loop(0, n_chunks, chunk, 0)


def _bspline_kernel_general(x_ref, grid_ref, invl_ref, invrn_ref, o_ref, *, k, gext):
    # General (possibly non-uniform) extended grid fallback.
    # x_ref:     (CB, TD, 128)
    # grid_ref:  (TD, gext)   extended knots
    # invl_ref:  (TD, W)      1/(g[j+p]-g[j]) packed by level;   level k pre-scaled by +coef
    # invrn_ref: (TD, W)     -1/(g[j+p+1]-g[j+1]) packed by level; level k pre-scaled by coef
    nb = gext - 1 - k
    g = grid_ref[...]
    il = invl_ref[...]
    irn = invrn_ref[...]
    offs, off = [], 0
    for p in range(1, k + 1):
        offs.append(off)
        off += gext - 1 - p
    n_chunks = x_ref.shape[0]

    def chunk(i, carry):
        x = x_ref[i]
        dx = [x - g[:, j:j + 1] for j in range(gext)]       # x - g_j hoisted once per chunk
        ge = [x >= g[:, j:j + 1] for j in range(gext)]       # shared comparisons
        mask = [jnp.logical_and(ge[j], jnp.logical_not(ge[j + 1]))
                for j in range(gext - 1)]
        o1 = offs[0]
        # p = 1 fused with the degree-0 masks (right-hand term uses the negated table)
        lvl1 = [jnp.where(mask[j], dx[j] * il[:, o1 + j:o1 + j + 1], 0.0)
                + jnp.where(mask[j + 1], dx[j + 2] * irn[:, o1 + j:o1 + j + 1], 0.0)
                for j in range(gext - 2)]
        if k == 1:
            acc = lvl1[0]
            for j in range(1, nb):
                acc = acc + lvl1[j]
        else:
            b = lvl1
            for p in range(2, k):
                op = offs[p - 1]
                b = [dx[j] * il[:, op + j:op + j + 1] * b[j]
                     + dx[j + p + 1] * irn[:, op + j:op + j + 1] * b[j + 1]
                     for j in range(gext - 1 - p)]
            ok = offs[k - 1]
            acc = None
            for j in range(nb):   # level-k tables carry the coefficients -> pure FMAs + adds
                t = (dx[j] * il[:, ok + j:ok + j + 1] * b[j]
                     + dx[j + k + 1] * irn[:, ok + j:ok + j + 1] * b[j + 1])
                acc = t if acc is None else acc + t
        o_ref[i, :, :] = acc.astype(o_ref.dtype)
        return carry

    lax.fori_loop(0, n_chunks, chunk, 0)


# ----------------------------------------- wrapper -----------------------------------------

def _round_up(a, m):
    return (a + m - 1) // m * m


def _is_uniform(grid_ext, tol=1e-5):
    # Host-side check; falls back to the general kernel when under tracing.
    try:
        g = np.asarray(jax.device_get(grid_ext)).astype(np.float64)
    except Exception:
        return False
    dg = np.diff(g, axis=1)
    h = (g[:, -1:] - g[:, :1]) / (g.shape[1] - 1)
    return bool(np.all(np.abs(dg - h) <= tol * np.maximum(np.abs(h), 1e-12)))


def bspline_forward(x, grid_ext, coef, k, *, dim_tile=8, batch_chunk_tile=32,
                    uniform_grid=None, interpret=False):
    """x: (batch, input_dim) -> (batch, input_dim); grid_ext: (D, G+1+2k); coef: (D, G+k)."""
    assert k >= 1
    batch, d = x.shape
    gext = grid_ext.shape[1]
    nb = coef.shape[1]
    assert nb == gext - 1 - k
    assert grid_ext.shape[0] == d and coef.shape[0] == d
    in_dtype = x.dtype
    f32 = jnp.float32

    # bf16 models: store the kernel output directly in bf16 (halves output HBM traffic
    # on v6e/v7x). All math stays f32 (v5e VPU has no bf16 arithmetic).
    store_dtype = jnp.bfloat16 if in_dtype == jnp.bfloat16 else f32

    x = x.astype(f32)
    grid_ext = grid_ext.astype(f32)
    coef = coef.astype(f32)

    if uniform_grid is None:
        uniform_grid = _is_uniform(grid_ext)

    # --- tiling: batch split into lane chunks of 128; dims into sublane blocks of 8 ---
    LANES = 128
    dt = max(8, _round_up(dim_tile, 8))
    d_pad = _round_up(d, dt)
    n_chunks = pl.cdiv(batch, LANES)
    cb = n_chunks if n_chunks <= batch_chunk_tile else batch_chunk_tile
    cb = max(cb, 1)
    nc_pad = _round_up(n_chunks, cb)
    b_pad = nc_pad * LANES

    # (batch, D) -> (chunks, D, 128): batch on lanes, dims on sublanes; the kernel's
    # inner fori_loop walks native (dt, 128) tiles via a leading-axis dynamic index.
    xp = jnp.pad(x, ((0, b_pad - batch), (0, d_pad - d)))
    x_k = xp.reshape(nc_pad, LANES, d_pad).transpose(0, 2, 1)   # (nc_pad, d_pad, 128)

    pad_rows = ((0, d_pad - d), (0, 0))          # edge-pad keeps padded rows finite
    grid_dims = (d_pad // dt, nc_pad // cb)      # batch axis innermost -> constants never re-DMA'd
    x_spec = pl.BlockSpec((cb, dt, LANES), lambda i, j: (j, i, 0))
    o_spec = pl.BlockSpec((cb, dt, LANES), lambda i, j: (j, i, 0))

    work = d_pad * b_pad
    cost = pl.CostEstimate(flops=150 * work, transcendentals=0, bytes_accessed=8 * work)
    tile_bytes = cb * dt * LANES * 4
    vmem_bytes = int(min(60 * 1024 * 1024, max(6 * tile_bytes + (2 << 20), 16 << 20)))
    cparams = pltpu.CompilerParams(
        dimension_semantics=("parallel", "parallel"),
        vmem_limit_bytes=vmem_bytes)
    kwargs = dict(k=k, gext=gext)

    if uniform_grid:
        # Uniform extended grid (the module's default): g[d,j] = g0[d] + j*h[d];
        # knot reciprocals collapse to 1/h, and the per-level 1/p factors plus the
        # coefficients fold into a single coef/k! table.
        g0 = grid_ext[:, :1]
        h = (grid_ext[:, -1:] - grid_ext[:, :1]) / (gext - 1)
        kfact = float(np.prod(np.arange(1, k + 1)))
        par = jnp.concatenate([g0, 1.0 / h, coef / kfact], axis=1)       # (D, 2+nb)
        par = jnp.pad(par, pad_rows, mode='edge')
        out = pl.pallas_call(
            functools.partial(_bspline_kernel_uniform, **kwargs),
            out_shape=jax.ShapeDtypeStruct((nc_pad, d_pad, LANES), store_dtype),
            grid=grid_dims,
            in_specs=[x_spec,
                      pl.BlockSpec((dt, 2 + nb), lambda i, j: (i, 0))],
            out_specs=o_spec,
            compiler_params=cparams,
            cost_estimate=cost,
            interpret=interpret,
        )(x_k, par)
    else:
        # Exact reciprocal knot-spacing tables (computed once, wrapper side, real divide);
        # right-hand table negated; level-k tables pre-scaled by the coefficients.
        invl_parts, invrn_parts = [], []
        for p in range(1, k + 1):
            il = 1.0 / (grid_ext[:, p:-1] - grid_ext[:, :-(p + 1)])
            ir = 1.0 / (grid_ext[:, p + 1:] - grid_ext[:, 1:-p])
            if p == k:
                il = il * coef
                ir = ir * coef
            invl_parts.append(il)
            invrn_parts.append(-ir)
        invl = jnp.pad(jnp.concatenate(invl_parts, axis=1), pad_rows, mode='edge')
        invrn = jnp.pad(jnp.concatenate(invrn_parts, axis=1), pad_rows, mode='edge')
        grid_p = jnp.pad(grid_ext, pad_rows, mode='edge')
        w = invl.shape[1]
        out = pl.pallas_call(
            functools.partial(_bspline_kernel_general, **kwargs),
            out_shape=jax.ShapeDtypeStruct((nc_pad, d_pad, LANES), store_dtype),
            grid=grid_dims,
            in_specs=[x_spec,
                      pl.BlockSpec((dt, gext), lambda i, j: (i, 0)),
                      pl.BlockSpec((dt, w), lambda i, j: (i, 0)),
                      pl.BlockSpec((dt, w), lambda i, j: (i, 0))],
            out_specs=o_spec,
            compiler_params=cparams,
            cost_estimate=cost,
            interpret=interpret,
        )(x_k, grid_p, invl, invrn)

    # (chunks, D, 128) -> (batch, D)
    y = out.transpose(0, 2, 1).reshape(b_pad, d_pad)[:batch, :d]
    return y.astype(in_dtype)


# ------------------------------------------- demo -------------------------------------------

if __name__ == "__main__":
    input_dim, grid_num, k = 4, 5, 3
    grid_range = (-1.0, 1.0)
    batch = 16

    # Deterministic parameter construction mirroring BSpline.__init__
    grid = jnp.einsum(
        'i,j->ij',
        jnp.ones((input_dim,), jnp.float32),
        jnp.linspace(grid_range[0], grid_range[1], grid_num + 1).astype(jnp.float32),
    )                                                    # (D, G+1)
    key = jax.random.PRNGKey(0)
    k_noise, k_x = jax.random.split(key)
    noises = (jax.random.uniform(k_noise, grid.shape, jnp.float32) - 0.5) * 0.1 / grid_num
    coef = curve2coef(grid, noises, grid, k)             # (D, G+k)    init-time glue (pinv)
    grid_ext = extend_grid(grid, k)                      # (D, G+1+2k)

    x = jax.random.uniform(k_x, (batch, input_dim), jnp.float32,
                           minval=grid_range[0], maxval=grid_range[1])

    # Primary (uniform-grid) path and the general fallback path.
    y_uni = bspline_forward(x, grid_ext, coef, k)
    y_gen = bspline_forward(x, grid_ext, coef, k, uniform_grid=False)
    jax.block_until_ready((y_uni, y_gen))

    # pure-JAX reference (same math, no Pallas)
    y_ref = jnp.einsum('db,dbn->dn', coef, b_batch_ref(x.T, grid_ext, k)).T
    assert y_uni.shape == x.shape
    assert jnp.allclose(y_uni, y_ref, atol=1e-5, rtol=1e-5)
    assert jnp.allclose(y_gen, y_ref, atol=1e-5, rtol=1e-5)

    print("KERNEL_OK")
</pallas_src>

<mosaic_0001>
module attributes {stable_mosaic.version = 11 : i64} {
  func.func @_bspline_kernel_uniform(%arg0: i32, %arg1: i32, %arg2: memref<1x8x128xf32, #tpu.memory_space<vmem>>, %arg3: memref<8x10xf32, #tpu.memory_space<vmem>>, %arg4: memref<1x8x128xf32, #tpu.memory_space<vmem>>) attributes {dimension_semantics = [#tpu.dimension_semantics<parallel>, #tpu.dimension_semantics<parallel>], iteration_bounds = array<i64: 1, 1>, scalar_prefetch = 0 : i64, scratch_operands = 0 : i64, tpu.core_type = #tpu.core_type<tc>, window_params = [{transform_indices = @transform_0, window_bounds = array<i64: 1, 8, 128>}, {transform_indices = @transform_1, window_bounds = array<i64: 8, 10>}, {transform_indices = @transform_2, window_bounds = array<i64: 1, 8, 128>}]} {
    %c0 = arith.constant 0 : index
    %c0_0 = arith.constant 0 : index
    %0 = vector.load %arg3[%c0, %c0_0] : memref<8x10xf32, #tpu.memory_space<vmem>>, vector<8x10xf32>
    %1 = vector.extract_strided_slice %0 {offsets = [0, 0], sizes = [8, 1], strides = [1, 1]} : vector<8x10xf32> to vector<8x1xf32>
    %2 = vector.extract_strided_slice %0 {offsets = [0, 1], sizes = [8, 1], strides = [1, 1]} : vector<8x10xf32> to vector<8x1xf32>
    %3 = vector.extract_strided_slice %0 {offsets = [0, 2], sizes = [8, 1], strides = [1, 1]} : vector<8x10xf32> to vector<8x1xf32>
    %4 = vector.extract_strided_slice %0 {offsets = [0, 3], sizes = [8, 1], strides = [1, 1]} : vector<8x10xf32> to vector<8x1xf32>
    %5 = vector.extract_strided_slice %0 {offsets = [0, 4], sizes = [8, 1], strides = [1, 1]} : vector<8x10xf32> to vector<8x1xf32>
    %6 = vector.extract_strided_slice %0 {offsets = [0, 5], sizes = [8, 1], strides = [1, 1]} : vector<8x10xf32> to vector<8x1xf32>
    %7 = vector.extract_strided_slice %0 {offsets = [0, 6], sizes = [8, 1], strides = [1, 1]} : vector<8x10xf32> to vector<8x1xf32>
    %8 = vector.extract_strided_slice %0 {offsets = [0, 7], sizes = [8, 1], strides = [1, 1]} : vector<8x10xf32> to vector<8x1xf32>
    %9 = vector.extract_strided_slice %0 {offsets = [0, 8], sizes = [8, 1], strides = [1, 1]} : vector<8x10xf32> to vector<8x1xf32>
    %10 = vector.extract_strided_slice %0 {offsets = [0, 9], sizes = [8, 1], strides = [1, 1]} : vector<8x10xf32> to vector<8x1xf32>
    %c0_i32 = arith.constant 0 : i32
    %11 = arith.index_cast %c0_i32 : i32 to index
    %c0_1 = arith.constant 0 : index
    %c0_2 = arith.constant 0 : index
    %12 = vector.load %arg2[%11, %c0_1, %c0_2] : memref<1x8x128xf32, #tpu.memory_space<vmem>>, vector<1x8x128xf32>
    %13 = vector.shape_cast %12 : vector<1x8x128xf32> to vector<8x128xf32>
    %14 = vector.broadcast %1 : vector<8x1xf32> to vector<8x128xf32>
    %15 = arith.subf %13, %14 : vector<8x128xf32>
    %16 = vector.broadcast %2 : vector<8x1xf32> to vector<8x128xf32>
    %17 = arith.mulf %15, %16 : vector<8x128xf32>
    %cst = arith.constant 0.000000e+00 : f32
    %18 = vector.broadcast %cst : f32 to vector<8x128xf32>
    %19 = arith.subf %17, %18 : vector<8x128xf32>
    %cst_3 = arith.constant 1.000000e+00 : f32
    %20 = vector.broadcast %cst_3 : f32 to vector<8x128xf32>
    %21 = arith.subf %17, %20 : vector<8x128xf32>
    %cst_4 = arith.constant 2.000000e+00 : f32
    %22 = vector.broadcast %cst_4 : f32 to vector<8x128xf32>
    %23 = arith.subf %17, %22 : vector<8x128xf32>
    %cst_5 = arith.constant 3.000000e+00 : f32
    %24 = vector.broadcast %cst_5 : f32 to vector<8x128xf32>
    %25 = arith.subf %17, %24 : vector<8x128xf32>
    %cst_6 = arith.constant 4.000000e+00 : f32
    %26 = vector.broadcast %cst_6 : f32 to vector<8x128xf32>
    %27 = arith.subf %17, %26 : vector<8x128xf32>
    %cst_7 = arith.constant 5.000000e+00 : f32
    %28 = vector.broadcast %cst_7 : f32 to vector<8x128xf32>
    %29 = arith.subf %17, %28 : vector<8x128xf32>
    %cst_8 = arith.constant 6.000000e+00 : f32
    %30 = vector.broadcast %cst_8 : f32 to vector<8x128xf32>
    %31 = arith.subf %17, %30 : vector<8x128xf32>
    %cst_9 = arith.constant 7.000000e+00 : f32
    %32 = vector.broadcast %cst_9 : f32 to vector<8x128xf32>
    %33 = arith.subf %17, %32 : vector<8x128xf32>
    %cst_10 = arith.constant 8.000000e+00 : f32
    %34 = vector.broadcast %cst_10 : f32 to vector<8x128xf32>
    %35 = arith.subf %17, %34 : vector<8x128xf32>
    %cst_11 = arith.constant 9.000000e+00 : f32
    %36 = vector.broadcast %cst_11 : f32 to vector<8x128xf32>
    %37 = arith.subf %17, %36 : vector<8x128xf32>
    %cst_12 = arith.constant 1.000000e+01 : f32
    %38 = vector.broadcast %cst_12 : f32 to vector<8x128xf32>
    %39 = arith.subf %17, %38 : vector<8x128xf32>
    %cst_13 = arith.constant 1.100000e+01 : f32
    %40 = vector.broadcast %cst_13 : f32 to vector<8x128xf32>
    %41 = arith.subf %17, %40 : vector<8x128xf32>
    %cst_14 = arith.constant 0.000000e+00 : f32
    %42 = vector.broadcast %cst_14 : f32 to vector<8x128xf32>
    %43 = arith.cmpf oge, %17, %42 : vector<8x128xf32>
    %cst_15 = arith.constant 1.000000e+00 : f32
    %44 = vector.broadcast %cst_15 : f32 to vector<8x128xf32>
    %45 = arith.cmpf oge, %17, %44 : vector<8x128xf32>
    %cst_16 = arith.constant 2.000000e+00 : f32
    %46 = vector.broadcast %cst_16 : f32 to vector<8x128xf32>
    %47 = arith.cmpf oge, %17, %46 : vector<8x128xf32>
    %cst_17 = arith.constant 3.000000e+00 : f32
    %48 = vector.broadcast %cst_17 : f32 to vector<8x128xf32>
    %49 = arith.cmpf oge, %17, %48 : vector<8x128xf32>
    %cst_18 = arith.constant 4.000000e+00 : f32
    %50 = vector.broadcast %cst_18 : f32 to vector<8x128xf32>
    %51 = arith.cmpf oge, %17, %50 : vector<8x128xf32>
    %cst_19 = arith.constant 5.000000e+00 : f32
    %52 = vector.broadcast %cst_19 : f32 to vector<8x128xf32>
    %53 = arith.cmpf oge, %17, %52 : vector<8x128xf32>
    %cst_20 = arith.constant 6.000000e+00 : f32
    %54 = vector.broadcast %cst_20 : f32 to vector<8x128xf32>
    %55 = arith.cmpf oge, %17, %54 : vector<8x128xf32>
    %cst_21 = arith.constant 7.000000e+00 : f32
    %56 = vector.broadcast %cst_21 : f32 to vector<8x128xf32>
    %57 = arith.cmpf oge, %17, %56 : vector<8x128xf32>
    %cst_22 = arith.constant 8.000000e+00 : f32
    %58 = vector.broadcast %cst_22 : f32 to vector<8x128xf32>
    %59 = arith.cmpf oge, %17, %58 : vector<8x128xf32>
    %cst_23 = arith.constant 9.000000e+00 : f32
    %60 = vector.broadcast %cst_23 : f32 to vector<8x128xf32>
    %61 = arith.cmpf oge, %17, %60 : vector<8x128xf32>
    %cst_24 = arith.constant 1.000000e+01 : f32
    %62 = vector.broadcast %cst_24 : f32 to vector<8x128xf32>
    %63 = arith.cmpf oge, %17, %62 : vector<8x128xf32>
    %cst_25 = arith.constant 1.100000e+01 : f32
    %64 = vector.broadcast %cst_25 : f32 to vector<8x128xf32>
    %65 = arith.cmpf oge, %17, %64 : vector<8x128xf32>
    %cst_26 = arith.constant dense<true> : vector<8x128xi1>
    %66 = arith.xori %45, %cst_26 : vector<8x128xi1>
    %67 = arith.andi %43, %66 : vector<8x128xi1>
    %cst_27 = arith.constant dense<true> : vector<8x128xi1>
    %68 = arith.xori %47, %cst_27 : vector<8x128xi1>
    %69 = arith.andi %45, %68 : vector<8x128xi1>
    %cst_28 = arith.constant dense<true> : vector<8x128xi1>
    %70 = arith.xori %49, %cst_28 : vector<8x128xi1>
    %71 = arith.andi %47, %70 : vector<8x128xi1>
    %cst_29 = arith.constant dense<true> : vector<8x128xi1>
    %72 = arith.xori %51, %cst_29 : vector<8x128xi1>
    %73 = arith.andi %49, %72 : vector<8x128xi1>
    %cst_30 = arith.constant dense<true> : vector<8x128xi1>
    %74 = arith.xori %53, %cst_30 : vector<8x128xi1>
    %75 = arith.andi %51, %74 : vector<8x128xi1>
    %cst_31 = arith.constant dense<true> : vector<8x128xi1>
    %76 = arith.xori %55, %cst_31 : vector<8x128xi1>
    %77 = arith.andi %53, %76 : vector<8x128xi1>
    %cst_32 = arith.constant dense<true> : vector<8x128xi1>
    %78 = arith.xori %57, %cst_32 : vector<8x128xi1>
    %79 = arith.andi %55, %78 : vector<8x128xi1>
    %cst_33 = arith.constant dense<true> : vector<8x128xi1>
    %80 = arith.xori %59, %cst_33 : vector<8x128xi1>
    %81 = arith.andi %57, %80 : vector<8x128xi1>
    %cst_34 = arith.constant dense<true> : vector<8x128xi1>
    %82 = arith.xori %61, %cst_34 : vector<8x128xi1>
    %83 = arith.andi %59, %82 : vector<8x128xi1>
    %cst_35 = arith.constant dense<true> : vector<8x128xi1>
    %84 = arith.xori %63, %cst_35 : vector<8x128xi1>
    %85 = arith.andi %61, %84 : vector<8x128xi1>
    %cst_36 = arith.constant dense<true> : vector<8x128xi1>
    %86 = arith.xori %65, %cst_36 : vector<8x128xi1>
    %87 = arith.andi %63, %86 : vector<8x128xi1>
    %cst_37 = arith.constant 0.000000e+00 : f32
    %88 = vector.broadcast %cst_37 : f32 to vector<8x128xf32>
    %89 = arith.select %67, %19, %88 : vector<8x128xi1>, vector<8x128xf32>
    %cst_38 = arith.constant 0.000000e+00 : f32
    %90 = vector.broadcast %cst_38 : f32 to vector<8x128xf32>
    %91 = arith.select %69, %23, %90 : vector<8x128xi1>, vector<8x128xf32>
    %92 = arith.subf %89, %91 : vector<8x128xf32>
    %cst_39 = arith.constant 0.000000e+00 : f32
    %93 = vector.broadcast %cst_39 : f32 to vector<8x128xf32>
    %94 = arith.select %69, %21, %93 : vector<8x128xi1>, vector<8x128xf32>
    %cst_40 = arith.constant 0.000000e+00 : f32
    %95 = vector.broadcast %cst_40 : f32 to vector<8x128xf32>
    %96 = arith.select %71, %25, %95 : vector<8x128xi1>, vector<8x128xf32>
    %97 = arith.subf %94, %96 : vector<8x128xf32>
    %cst_41 = arith.constant 0.000000e+00 : f32
    %98 = vector.broadcast %cst_41 : f32 to vector<8x128xf32>
    %99 = arith.select %71, %23, %98 : vector<8x128xi1>, vector<8x128xf32>
    %cst_42 = arith.constant 0.000000e+00 : f32
    %100 = vector.broadcast %cst_42 : f32 to vector<8x128xf32>
    %101 = arith.select %73, %27, %100 : vector<8x128xi1>, vector<8x128xf32>
    %102 = arith.subf %99, %101 : vector<8x128xf32>
    %cst_43 = arith.constant 0.000000e+00 : f32
    %103 = vector.broadcast %cst_43 : f32 to vector<8x128xf32>
    %104 = arith.select %73, %25, %103 : vector<8x128xi1>, vector<8x128xf32>
    %cst_44 = arith.constant 0.000000e+00 : f32
    %105 = vector.broadcast %cst_44 : f32 to vector<8x128xf32>
    %106 = arith.select %75, %29, %105 : vector<8x128xi1>, vector<8x128xf32>
    %107 = arith.subf %104, %106 : vector<8x128xf32>
    %cst_45 = arith.constant 0.000000e+00 : f32
    %108 = vector.broadcast %cst_45 : f32 to vector<8x128xf32>
    %109 = arith.select %75, %27, %108 : vector<8x128xi1>, vector<8x128xf32>
    %cst_46 = arith.constant 0.000000e+00 : f32
    %110 = vector.broadcast %cst_46 : f32 to vector<8x128xf32>
    %111 = arith.select %77, %31, %110 : vector<8x128xi1>, vector<8x128xf32>
    %112 = arith.subf %109, %111 : vector<8x128xf32>
    %cst_47 = arith.constant 0.000000e+00 : f32
    %113 = vector.broadcast %cst_47 : f32 to vector<8x128xf32>
    %114 = arith.select %77, %29, %113 : vector<8x128xi1>, vector<8x128xf32>
    %cst_48 = arith.constant 0.000000e+00 : f32
    %115 = vector.broadcast %cst_48 : f32 to vector<8x128xf32>
    %116 = arith.select %79, %33, %115 : vector<8x128xi1>, vector<8x128xf32>
    %117 = arith.subf %114, %116 : vector<8x128xf32>
    %cst_49 = arith.constant 0.000000e+00 : f32
    %118 = vector.broadcast %cst_49 : f32 to vector<8x128xf32>
    %119 = arith.select %79, %31, %118 : vector<8x128xi1>, vector<8x128xf32>
    %cst_50 = arith.constant 0.000000e+00 : f32
    %120 = vector.broadcast %cst_50 : f32 to vector<8x128xf32>
    %121 = arith.select %81, %35, %120 : vector<8x128xi1>, vector<8x128xf32>
    %122 = arith.subf %119, %121 : vector<8x128xf32>
    %cst_51 = arith.constant 0.000000e+00 : f32
    %123 = vector.broadcast %cst_51 : f32 to vector<8x128xf32>
    %124 = arith.select %81, %33, %123 : vector<8x128xi1>, vector<8x128xf32>
    %cst_52 = arith.constant 0.000000e+00 : f32
    %125 = vector.broadcast %cst_52 : f32 to vector<8x128xf32>
    %126 = arith.select %83, %37, %125 : vector<8x128xi1>, vector<8x128xf32>
    %127 = arith.subf %124, %126 : vector<8x128xf32>
    %cst_53 = arith.constant 0.000000e+00 : f32
    %128 = vector.broadcast %cst_53 : f32 to vector<8x128xf32>
    %129 = arith.select %83, %35, %128 : vector<8x128xi1>, vector<8x128xf32>
    %cst_54 = arith.constant 0.000000e+00 : f32
    %130 = vector.broadcast %cst_54 : f32 to vector<8x128xf32>
    %131 = arith.select %85, %39, %130 : vector<8x128xi1>, vector<8x128xf32>
    %132 = arith.subf %129, %131 : vector<8x128xf32>
    %cst_55 = arith.constant 0.000000e+00 : f32
    %133 = vector.broadcast %cst_55 : f32 to vector<8x128xf32>
    %134 = arith.select %85, %37, %133 : vector<8x128xi1>, vector<8x128xf32>
    %cst_56 = arith.constant 0.000000e+00 : f32
    %135 = vector.broadcast %cst_56 : f32 to vector<8x128xf32>
    %136 = arith.select %87, %41, %135 : vector<8x128xi1>, vector<8x128xf32>
    %137 = arith.subf %134, %136 : vector<8x128xf32>
    %138 = arith.mulf %19, %92 : vector<8x128xf32>
    %139 = arith.mulf %25, %97 : vector<8x128xf32>
    %140 = arith.subf %138, %139 : vector<8x128xf32>
    %141 = arith.mulf %21, %97 : vector<8x128xf32>
    %142 = arith.mulf %27, %102 : vector<8x128xf32>
    %143 = arith.subf %141, %142 : vector<8x128xf32>
    %144 = arith.mulf %23, %102 : vector<8x128xf32>
    %145 = arith.mulf %29, %107 : vector<8x128xf32>
    %146 = arith.subf %144, %145 : vector<8x128xf32>
    %147 = arith.mulf %25, %107 : vector<8x128xf32>
    %148 = arith.mulf %31, %112 : vector<8x128xf32>
    %149 = arith.subf %147, %148 : vector<8x128xf32>
    %150 = arith.mulf %27, %112 : vector<8x128xf32>
    %151 = arith.mulf %33, %117 : vector<8x128xf32>
    %152 = arith.subf %150, %151 : vector<8x128xf32>
    %153 = arith.mulf %29, %117 : vector<8x128xf32>
    %154 = arith.mulf %35, %122 : vector<8x128xf32>
    %155 = arith.subf %153, %154 : vector<8x128xf32>
    %156 = arith.mulf %31, %122 : vector<8x128xf32>
    %157 = arith.mulf %37, %127 : vector<8x128xf32>
    %158 = arith.subf %156, %157 : vector<8x128xf32>
    %159 = arith.mulf %33, %127 : vector<8x128xf32>
    %160 = arith.mulf %39, %132 : vector<8x128xf32>
    %161 = arith.subf %159, %160 : vector<8x128xf32>
    %162 = arith.mulf %35, %132 : vector<8x128xf32>
    %163 = arith.mulf %41, %137 : vector<8x128xf32>
    %164 = arith.subf %162, %163 : vector<8x128xf32>
    %165 = arith.mulf %19, %140 : vector<8x128xf32>
    %166 = arith.mulf %27, %143 : vector<8x128xf32>
    %167 = arith.subf %165, %166 : vector<8x128xf32>
    %168 = vector.broadcast %3 : vector<8x1xf32> to vector<8x128xf32>
    %169 = arith.mulf %168, %167 : vector<8x128xf32>
    %170 = arith.mulf %21, %143 : vector<8x128xf32>
    %171 = arith.mulf %29, %146 : vector<8x128xf32>
    %172 = arith.subf %170, %171 : vector<8x128xf32>
    %173 = vector.broadcast %4 : vector<8x1xf32> to vector<8x128xf32>
    %174 = arith.mulf %173, %172 : vector<8x128xf32>
    %175 = arith.addf %169, %174 : vector<8x128xf32>
    %176 = arith.mulf %23, %146 : vector<8x128xf32>
    %177 = arith.mulf %31, %149 : vector<8x128xf32>
    %178 = arith.subf %176, %177 : vector<8x128xf32>
    %179 = vector.broadcast %5 : vector<8x1xf32> to vector<8x128xf32>
    %180 = arith.mulf %179, %178 : vector<8x128xf32>
    %181 = arith.addf %175, %180 : vector<8x128xf32>
    %182 = arith.mulf %25, %149 : vector<8x128xf32>
    %183 = arith.mulf %33, %152 : vector<8x128xf32>
    %184 = arith.subf %182, %183 : vector<8x128xf32>
    %185 = vector.broadcast %6 : vector<8x1xf32> to vector<8x128xf32>
    %186 = arith.mulf %185, %184 : vector<8x128xf32>
    %187 = arith.addf %181, %186 : vector<8x128xf32>
    %188 = arith.mulf %27, %152 : vector<8x128xf32>
    %189 = arith.mulf %35, %155 : vector<8x128xf32>
    %190 = arith.subf %188, %189 : vector<8x128xf32>
    %191 = vector.broadcast %7 : vector<8x1xf32> to vector<8x128xf32>
    %192 = arith.mulf %191, %190 : vector<8x128xf32>
    %193 = arith.addf %187, %192 : vector<8x128xf32>
    %194 = arith.mulf %29, %155 : vector<8x128xf32>
    %195 = arith.mulf %37, %158 : vector<8x128xf32>
    %196 = arith.subf %194, %195 : vector<8x128xf32>
    %197 = vector.broadcast %8 : vector<8x1xf32> to vector<8x128xf32>
    %198 = arith.mulf %197, %196 : vector<8x128xf32>
    %199 = arith.addf %193, %198 : vector<8x128xf32>
    %200 = arith.mulf %31, %158 : vector<8x128xf32>
    %201 = arith.mulf %39, %161 : vector<8x128xf32>
    %202 = arith.subf %200, %201 : vector<8x128xf32>
    %203 = vector.broadcast %9 : vector<8x1xf32> to vector<8x128xf32>
    %204 = arith.mulf %203, %202 : vector<8x128xf32>
    %205 = arith.addf %199, %204 : vector<8x128xf32>
    %206 = arith.mulf %33, %161 : vector<8x128xf32>
    %207 = arith.mulf %41, %164 : vector<8x128xf32>
    %208 = arith.subf %206, %207 : vector<8x128xf32>
    %209 = vector.broadcast %10 : vector<8x1xf32> to vector<8x128xf32>
    %210 = arith.mulf %209, %208 : vector<8x128xf32>
    %211 = arith.addf %205, %210 : vector<8x128xf32>
    %212 = arith.index_cast %c0_i32 : i32 to index
    %c0_57 = arith.constant 0 : index
    %c0_58 = arith.constant 0 : index
    %213 = vector.load %arg4[%212, %c0_57, %c0_58] : memref<1x8x128xf32, #tpu.memory_space<vmem>>, vector<1x8x128xf32>
    %214 = vector.shape_cast %213 : vector<1x8x128xf32> to vector<8x128xf32>
    %215 = vector.shape_cast %211 : vector<8x128xf32> to vector<1x8x128xf32>
    tpu.vector_store %arg4[%212, %c0_57, %c0_58], %215 {strides = array<i32>} : memref<1x8x128xf32, #tpu.memory_space<vmem>>, vector<1x8x128xf32>,
    %c1_i32 = arith.constant 1 : i32
    return
  }
  func.func @transform_0(%arg0: i32, %arg1: i32) -> (i32, i32, i32) {
    %c0_i32 = arith.constant 0 : i32
    %c0_i32_0 = arith.constant 0 : i32
    return %arg1, %arg0, %c0_i32 : i32, i32, i32
  }
  func.func @transform_1(%arg0: i32, %arg1: i32) -> (i32, i32) {
    %c0_i32 = arith.constant 0 : i32
    %c0_i32_0 = arith.constant 0 : i32
    return %arg0, %c0_i32 : i32, i32
  }
  func.func @transform_2(%arg0: i32, %arg1: i32) -> (i32, i32, i32) {
    %c0_i32 = arith.constant 0 : i32
    %c0_i32_0 = arith.constant 0 : i32
    return %arg1, %arg0, %c0_i32 : i32, i32, i32
  }
}

</mosaic_0001>

<bundles_post_ra>
// kernel: tpu_custom_call.1
= control target key start
LH: loop header
LB: loop body
LE: loop exit
PB: predicated region body
PF: predicated region fallthrough
CT: control target
= control target key end

     0   :  { %7 = vsyncpa [#allocation3], 0  ;;  %s610_s0 = inlined_call_operand.hbm [shape: f32[1,8,128], index: 0, kind: input, shape index: {}]   ;;  %s611_s1 = inlined_call_operand.hbm [shape: f32[8,10], index: 1, kind: input, shape index: {}]   ;;  %s612_s2 = inlined_call_operand.hbm [shape: f32[1,8,128], index: 2, kind: output, shape index: {}]  }
   0x1   :  { %8 = vsyncpa [#allocation6], 0 }
   0x2   :  { %9 = vsyncpa [#allocation4], 0  ;;  %s341_s9 = smov [#allocation2]   ;;  %s342_s11 = smov [#allocation5]  }
   0x3   :  { %s16_s10 = sshll.u32 %s341_s9, 4  ;;  %s26_s12 = sshll.u32 %s342_s11, 4  ;;  %s17_s10 = int_to_ptr.vmem [resolvable:$true] %s16_s10  ;;  %s27_s12 = int_to_ptr.vmem [resolvable:$true] %s26_s12 }
   0x4   :  { %s283_s13 = scalar_lea.vmem %s17_s10, 128  ;;  %p288_p1 = scmp.lt.s32.totalorder %s17_s10, %s17_s10 }
   0x5   :  { %p284_p0 = scmp.ne.s32.totalorder %s17_s10, %s283_s13  ;;  %p289_p2 = scmp.lt.s32.totalorder %s283_s13, %s283_s13 }
   0x7   :  { %p290_p3 = por %p289_p2, %p288_p1 }
   0x9   :  { %p291_p4 = pnand %p290_p3, %p284_p0 }
   0xb   :  { %294 = shalt.err (!%p291_p4)
}
   0xc   :  { %19 = dma.hbm_to_vmem [thread:$0]  %s610_s0, 128, %s17_s10, [#allocation3]  }
   0xd   :  { %s303_s16 = scalar_lea.vmem %s27_s12, 128  ;;  %p308_p6 = scmp.lt.s32.totalorder %s27_s12, %s27_s12 }
   0xe   :  { %p304_p5 = scmp.ne.s32.totalorder %s27_s12, %s303_s16  ;;  %p309_p7 = scmp.lt.s32.totalorder %s303_s16, %s303_s16 }
  0x10   :  { %p310_p8 = por %p309_p7, %p308_p6 }
  0x12   :  { %p311_p9 = pnand %p310_p8, %p304_p5 }
  0x14   :  { %314 = shalt.err (!%p311_p9)
}
  0x15   :  { %29 = dma.hbm_to_vmem [thread:$0]  %s611_s1, 128, %s27_s12, [#allocation6]  }
  0x16   :  { %335 = dma.done.wait [#allocation3], 128  }
  0x17   :  { %336 = vsyncadd [#allocation3], 4294967168 }
  0x18   :  { %337 = dma.done.wait [#allocation6], 128  }
  0x19   :  { %338 = vsyncadd [#allocation6], 4294967168  ;;  %v343_v0 = vmov 2   ;;  %v344_v1 = vmov 0   ;;  %v36_v2 = vld [vmem:[#allocation5] sm:$0xff]  ;;  %v345_v3 = vmov 3  }
  0x1a   :  { %266 = vset.pattern.permute.xlu1 %v343_v0  ;;  %264 = vset.pattern.permute.xlu0 %v344_v1  ;;  %v346_v4 = vmov 1   ;;  %v347_v5 = vmov 4   ;;  %v348_v6 = vmov 5   ;;  %v349_v7 = vmov 6   ;;  %v37_v12 = vld [vmem:[#allocation2] sm:$0xff]  ;;  %s354_s0 = smov [#allocation7]  }
  0x1b   :  { %155 = vperm.xlu1 %266, %v36_v2   ;;  %40 = vperm.xlu0 %264, %v36_v2   ;;  %v350_v8 = vmov 8   ;;  %v351_v9 = vmov 7   ;;  %v352_v10 = vmov 9   ;;  %vm353_vm3 = vmmov 1   ;;  %s229_s1 = sshll.u32 %s354_s0, 4  ;;  %s230_s1 = int_to_ptr.vmem [resolvable:$true] %s229_s1 }
  0x1c   :  { %s315_s19 = scalar_lea.vmem %s230_s1, 128  ;;  %p320_p11 = scmp.lt.s32.totalorder %s230_s1, %s230_s1 }
  0x1d   :  { %p316_p10 = scmp.ne.s32.totalorder %s230_s1, %s315_s19  ;;  %p321_p12 = scmp.lt.s32.totalorder %s315_s19, %s315_s19 }
  0x1f   :  { %267 = vset.pattern.permute.xlu1 %v345_v3  ;;  %265 = vset.pattern.permute.xlu0 %v346_v4  ;;  %p322_p13 = por %p321_p12, %p320_p11 }
  0x20   :  { %163 = vperm.xlu1 %267, %v36_v2   ;;  %45 = vperm.xlu0 %265, %v36_v2  }
  0x21   :  { %p323_p0 = pnand %p322_p13, %p316_p10 }
  0x24   :  { %268 = vset.pattern.permute.xlu1 %v347_v5  ;;  %269 = vset.pattern.permute.xlu0 %v348_v6 }
  0x25   :  { %172 = vperm.xlu1 %268, %v36_v2   ;;  %181 = vperm.xlu0 %269, %v36_v2  }
  0x29   :  { %270 = vset.pattern.permute.xlu1 %v349_v7  ;;  %272 = vset.pattern.permute.xlu0 %v350_v8 }
  0x2a   :  { %190 = vperm.xlu1 %270, %v36_v2   ;;  %208 = vperm.xlu0 %272, %v36_v2  }
  0x2e   :  { %271 = vset.pattern.permute.xlu1 %v351_v9  ;;  %274 = vset.pattern.permute.xlu0 %v352_v10 }
  0x2f   :  { %199 = vperm.xlu1 %271, %v36_v2  }
  0x33   :  { %273 = vset.pattern.permute.xlu1 %v352_v10 }
  0x34   :  { %217 = vperm.xlu1 %273, %v36_v2  }
  0x96   :  { %v41_v11 = vpop.permute.xlu0 %40  ;;  %v396_v20 = vpop.permute.xlu1 %155 }
  0x97   :  { %v43_v13 = vsub.f32 %v37_v12, %v41_v11 }
  0x9b   :  { %v46_v14 = vpop.permute.xlu0 %45  ;;  %v164_v38 = vpop.permute.xlu1 %163 }
  0x9c   :  { %v376_v15 = vmul.f32 %v46_v14, %v43_v13 }
  0x9e   :  { %vm60_vm0 = vcmp.ge.f32.partialorder %v376_v15, 0.0  ;;  %vm61_vm1 = vcmp.ge.f32.partialorder %v376_v15, 1.0  ;;  %vm62_vm2 = vcmp.ge.f32.partialorder %v376_v15, 2.0  ;;  %v382_v16 = vadd.f32 -1.0, %v376_v15 }
  0x9f   :  { %v385_v17 = vadd.f32 -2.0, %v376_v15  ;;  %vm72_vm4 = vmxor %vm61_vm1, %vm353_vm3  ;;  %vm63_vm5 = vcmp.ge.f32.partialorder %v376_v15, 3.0  ;;  %v390_v18 = vadd.f32 -3.0, %v376_v15  ;;  %vm64_vm8 = vcmp.ge.f32.partialorder %v376_v15, 4.0 }
  0xa0   :  { %vm73_vm6 = vmand %vm60_vm0, %vm72_vm4  ;;  %v404_v22 = vadd.f32 -4.0, %v376_v15  ;;  %v416_v25 = vadd.f32 -5.0, %v376_v15  ;;  %vm65_vm11 = vcmp.ge.f32.partialorder %v376_v15, 5.0  ;;  %v435_v30 = vadd.f32 -6.0, %v376_v15  ;;  %v173_v2 = vpop.permute.xlu1 %172  ;;  %v182_v51 = vpop.permute.xlu0 %181 }
  0xa1   :  { %vm74_vm7 = vmxor %vm62_vm2, %vm353_vm3  ;;  %v94_v19 = vsel %vm73_vm6, %v376_v15, 0.0  ;;  %vm66_vm14 = vcmp.ge.f32.partialorder %v376_v15, 6.0  ;;  %v446_v34 = vadd.f32 -7.0, %v376_v15  ;;  %v449_v35 = vadd.f32 -8.0, %v376_v15 }
  0xa2   :  { %vm399_vm9 = vmand %vm61_vm1, %vm74_vm7  ;;  %vm67_vm1 = vcmp.ge.f32.partialorder %v376_v15, 7.0  ;;  %v471_v43 = vadd.f32 -9.0, %v376_v15  ;;  %vm69_vm6 = vcmp.ge.f32.partialorder %v376_v15, 9.0  ;;  %v484_v46 = vadd.f32 -10.0, %v376_v15 }
  0xa3   :  { %vm76_vm10 = vmxor %vm63_vm5, %vm353_vm3  ;;  %v95_v23 = vsel %vm399_vm9, %v385_v17, 0.0  ;;  %v97_v24 = vsel %vm399_vm9, %v382_v16, 0.0  ;;  %vm70_vm9 = vcmp.ge.f32.partialorder %v376_v15, 10.0  ;;  %v505_v54 = vadd.f32 -11.0, %v376_v15 }
  0xa4   :  { %vm421_vm12 = vmand %vm62_vm2, %vm76_vm10  ;;  %v96_v27 = vsub.f32 %v94_v19, %v95_v23  ;;  %vm68_vm2 = vcmp.ge.f32.partialorder %v376_v15, 8.0 }
  0xa5   :  { %vm78_vm13 = vmxor %vm64_vm8, %vm353_vm3  ;;  %v98_v28 = vsel %vm421_vm12, %v390_v18, 0.0  ;;  %v100_v29 = vsel %vm421_vm12, %v385_v17, 0.0  ;;  %vm71_vm12 = vcmp.ge.f32.partialorder %v376_v15, 11.0 }
  0xa6   :  { %vm440_vm15 = vmand %vm63_vm5, %vm78_vm13  ;;  %v99_v32 = vsub.f32 %v97_v24, %v98_v28  ;;  %v124_v33 = vmul.f32 %v96_v27, %v376_v15 }
  0xa7   :  { %vm80_vm0 = vmxor %vm65_vm11, %vm353_vm3  ;;  %v101_v36 = vsel %vm440_vm15, %v404_v22, 0.0  ;;  %v103_v37 = vsel %vm440_vm15, %v390_v18, 0.0 }
  0xa8   :  { %vm464_vm4 = vmand %vm64_vm8, %vm80_vm0  ;;  %v102_v40 = vsub.f32 %v100_v29, %v101_v36  ;;  %v125_v41 = vmul.f32 %v390_v18, %v99_v32  ;;  %v127_v42 = vmul.f32 %v382_v16, %v99_v32  ;;  %v191_v36 = vpop.permute.xlu1 %190 }
  0xa9   :  { %v104_v44 = vsel %vm464_vm4, %v416_v25, 0.0  ;;  %vm82_vm5 = vmxor %vm66_vm14, %vm353_vm3  ;;  %v106_v45 = vsel %vm464_vm4, %v404_v22, 0.0 }
  0xaa   :  { %v105_v47 = vsub.f32 %v103_v37, %v104_v44  ;;  %v126_v48 = vsub.f32 %v124_v33, %v125_v41  ;;  %v128_v49 = vmul.f32 %v404_v22, %v102_v40  ;;  %v130_v50 = vmul.f32 %v385_v17, %v102_v40  ;;  %vm490_vm7 = vmand %vm65_vm11, %vm82_vm5 }
  0xab   :  { %v107_v52 = vsel %vm490_vm7, %v435_v30, 0.0  ;;  %vm84_vm8 = vmxor %vm67_vm1, %vm353_vm3  ;;  %v109_v53 = vsel %vm490_vm7, %v416_v25, 0.0 }
  0xac   :  { %v129_v55 = vsub.f32 %v127_v42, %v128_v49  ;;  %v131_v56 = vmul.f32 %v416_v25, %v105_v47  ;;  %v151_v57 = vmul.f32 %v126_v48, %v376_v15  ;;  %v108_v58 = vsub.f32 %v106_v45, %v107_v52  ;;  %vm511_vm10 = vmand %vm66_vm14, %vm84_vm8 }
  0xad   :  { %v133_v60 = vmul.f32 %v390_v18, %v105_v47  ;;  %vm86_vm11 = vmxor %vm68_vm2, %vm353_vm3  ;;  %v110_v61 = vsel %vm511_vm10, %v446_v34, 0.0  ;;  %v112_v62 = vsel %vm511_vm10, %v435_v30, 0.0 }
  0xae   :  { %v132_v63 = vsub.f32 %v130_v50, %v131_v56  ;;  %v152_v0 = vmul.f32 %v404_v22, %v129_v55  ;;  %v159_v1 = vmul.f32 %v382_v16, %v129_v55  ;;  %v134_v3 = vmul.f32 %v435_v30, %v108_v58  ;;  %vm531_vm13 = vmand %vm67_vm1, %vm86_vm11 }
  0xaf   :  { %v111_v5 = vsub.f32 %v109_v53, %v110_v61  ;;  %v113_v6 = vsel %vm531_vm13, %v449_v35, 0.0  ;;  %v136_v7 = vmul.f32 %v404_v22, %v108_v58  ;;  %vm88_vm14 = vmxor %vm69_vm6, %vm353_vm3  ;;  %v115_v8 = vsel %vm531_vm13, %v446_v34, 0.0 }
  0xb0   :  { %v153_v9 = vsub.f32 %v151_v57, %v152_v0  ;;  %v160_v10 = vmul.f32 %v416_v25, %v132_v63  ;;  %v135_v11 = vsub.f32 %v133_v60, %v134_v3  ;;  %v168_v12 = vmul.f32 %v385_v17, %v132_v63  ;;  %vm549_vm15 = vmand %vm68_vm2, %vm88_vm14  ;;  %v200_v60 = vpop.permute.xlu1 %199 }
  0xb1   :  { %v114_v14 = vsub.f32 %v112_v62, %v113_v6  ;;  %v137_v16 = vmul.f32 %v446_v34, %v111_v5  ;;  %v139_v19 = vmul.f32 %v416_v25, %v111_v5  ;;  %v116_v21 = vsel %vm549_vm15, %v471_v43, 0.0  ;;  %vm90_vm0 = vmxor %vm70_vm9, %vm353_vm3 }
  0xb2   :  { %v158_v17 = vmul.f32 %v396_v20, %v153_v9  ;;  %v161_v23 = vsub.f32 %v159_v1, %v160_v10  ;;  %v169_v24 = vmul.f32 %v435_v30, %v135_v11  ;;  %v177_v26 = vmul.f32 %v390_v18, %v135_v11  ;;  %vm566_vm1 = vmand %vm69_vm6, %vm90_vm0 }
  0xb3   :  { %v138_v28 = vsub.f32 %v136_v7, %v137_v16  ;;  %v140_v29 = vmul.f32 %v449_v35, %v114_v14  ;;  %v117_v31 = vsub.f32 %v115_v8, %v116_v21  ;;  %v142_v32 = vmul.f32 %v435_v30, %v114_v14  ;;  %vm92_vm2 = vmxor %vm71_vm12, %vm353_vm3  ;;  %v209_v7 = vpop.permute.xlu0 %208 }
  0xb4   :  { %v166_v20 = vmul.f32 %v164_v38, %v161_v23  ;;  %v170_v33 = vsub.f32 %v168_v12, %v169_v24  ;;  %v118_v18 = vsel %vm549_vm15, %v449_v35, 0.0  ;;  %v119_v37 = vsel %vm566_vm1, %v484_v46, 0.0  ;;  %vm586_vm3 = vmand %vm70_vm9, %vm92_vm2  ;;  %v218_v12 = vpop.permute.xlu1 %217 }
  0xb5   :  { %v141_v39 = vsub.f32 %v139_v19, %v140_v29  ;;  %v186_v40 = vmul.f32 %v404_v22, %v138_v28  ;;  %v178_v41 = vmul.f32 %v446_v34, %v138_v28  ;;  %v143_v42 = vmul.f32 %v471_v43, %v117_v31 }
  0xb6   :  { %v167_v44 = vadd.f32 %v166_v20, %v158_v17  ;;  %v175_v45 = vmul.f32 %v173_v2, %v170_v33  ;;  %v120_v47 = vsub.f32 %v118_v18, %v119_v37  ;;  %v145_v48 = vmul.f32 %v446_v34, %v117_v31 }
  0xb7   :  { %v187_v49 = vmul.f32 %v449_v35, %v141_v39  ;;  %v179_v50 = vsub.f32 %v177_v26, %v178_v41  ;;  %v144_v22 = vsub.f32 %v142_v32, %v143_v42  ;;  %v195_v52 = vmul.f32 %v416_v25, %v141_v39 }
  0xb8   :  { %v176_v53 = vadd.f32 %v175_v45, %v167_v44  ;;  %v146_v55 = vmul.f32 %v484_v46, %v120_v47  ;;  %v121_v15 = vsel %vm566_vm1, %v471_v43, 0.0  ;;  %v122_v56 = vsel %vm586_vm3, %v505_v54, 0.0 }
  0xb9   :  { %v188_v57 = vsub.f32 %v186_v40, %v187_v49  ;;  %v184_v58 = vmul.f32 %v182_v51, %v179_v50  ;;  %v196_v59 = vmul.f32 %v471_v43, %v144_v22  ;;  %v204_v62 = vmul.f32 %v435_v30, %v144_v22 }
  0xba   :  { %v147_v61 = vsub.f32 %v145_v48, %v146_v55  ;;  %v123_v25 = vsub.f32 %v121_v15, %v122_v56  ;;  %v148_v63 = vmul.f32 %v449_v35, %v120_v47 }
  0xbb   :  { %v193_v0 = vmul.f32 %v191_v36, %v188_v57  ;;  %v185_v1 = vadd.f32 %v184_v58, %v176_v53  ;;  %v197_v2 = vsub.f32 %v195_v52, %v196_v59 }
  0xbc   :  { %v205_v3 = vmul.f32 %v484_v46, %v147_v61  ;;  %v149_v4 = vmul.f32 %v505_v54, %v123_v25  ;;  %v213_v43 = vmul.f32 %v446_v34, %v147_v61 }
  0xbd   :  { %v194_v5 = vadd.f32 %v193_v0, %v185_v1  ;;  %v202_v6 = vmul.f32 %v200_v60, %v197_v2 }
  0xbe   :  { %v206_v8 = vsub.f32 %v204_v62, %v205_v3  ;;  %v150_v9 = vsub.f32 %v148_v63, %v149_v4 }
  0xbf   :  { %v203_v10 = vadd.f32 %v202_v6, %v194_v5 }
  0xc0   :  { %v211_v11 = vmul.f32 %v209_v7, %v206_v8  ;;  %v214_v30 = vmul.f32 %v505_v54, %v150_v9 }
  0xc2   :  { %v212_v35 = vadd.f32 %v211_v11, %v203_v10  ;;  %v215_v13 = vsub.f32 %v213_v43, %v214_v30 }
  0xc4   :  { %v220_v14 = vmul.f32 %v218_v12, %v215_v13 }
  0xc6   :  { %v221_v46 = vadd.f32 %v220_v14, %v212_v35 }
  0xc8   :  { %222 = vst [vmem:[#allocation7] sm:$0xff] %v221_v46 }
  0xc9   :  { %326 = shalt.err (!%p323_p0)
}
  0xca   :  { %232 = dma.vmem_to_hbm [thread:$0]  %s230_s1, 128, %s612_s2, [#allocation4]  }
  0xcb   :  { %339 = dma.done.wait [#allocation4], 128  }
  0xcc   :  { %340 = vsyncadd [#allocation4], 4294967168 }
  0xcd   :  { %236 = vsyncpa [#allocation3], 1 }
  0xce   :  { %237 = vsyncpa [#allocation6], 1 }
  0xcf   :  { %238 = vsyncpa [#allocation4], 1 }

</bundles_post_ra>
